<compile_context>
chip_gen: v7x
topology: tpu7x:2x2x1
jax: 0.10.0
libtpu: 0.0.40
codegen_flags: <defaults>
</compile_context>

<pallas_src>
import functools
import math
from typing import NamedTuple, Optional

import jax
import jax.numpy as jnp
from jax.experimental import pallas as pl
from jax.experimental.pallas import tpu as pltpu

_MIB = 1024 * 1024


def _round_up(x: int, m: int) -> int:
    return (x + m - 1) // m * m


def _vmem_capacity_bytes() -> int:
    """Physical per-core VMEM (v5e/v6e: 128 MiB, v7x: 64 MiB)."""
    try:
        return int(pltpu.get_tpu_info().vmem_capacity_bytes)
    except Exception:
        return 128 * _MIB


def _pick_vocab_tile(vocab: int, target: int) -> int:
    """Vocab tile: multiple of 128 (lane-dense stores), <= target, preferring an
    exact divisor of the vocab so no output padding / post-kernel slice copy."""
    v_aligned = _round_up(vocab, 128)
    target = max(128, min(_round_up(target, 128), v_aligned))
    if vocab % 128 == 0:
        for t in range(target, 0, -128):
            if vocab % t == 0:
                return t
    return target


class DecoderParams(NamedTuple):
    """One-time-prepared SimpleDecoder weights (see prepare_decoder_params)."""
    w1_t: jax.Array   # (H, H)      compute dtype, (in, out) layout
    b1: jax.Array     # (1, H)      float32
    w2_t: jax.Array   # (H, V_pad)  compute dtype, (in, out) layout, vocab-padded
    b2: jax.Array     # (1, V_pad)  float32, vocab-padded
    vocab: int        # true vocab size
    tv: int           # vocab tile (V_pad % tv == 0, tv % 128 == 0)


def prepare_decoder_params(w1, b1, w2, b2, *, tv: int = 512,
                           compute_dtype=jnp.bfloat16) -> DecoderParams:
    """Cast / transpose / pad the PyTorch-layout weights ONCE (hoisted out of
    the forward so the large vocab projection is never re-cast per call).

    w1: (H, H) (out, in);  b1: (H,);  w2: (V, H) (out, in);  b2: (V,).
    """
    hidden = w1.shape[0]
    vocab = w2.shape[0]
    tv = _pick_vocab_tile(vocab, tv)
    v_pad = _round_up(vocab, tv)

    w1_t = jnp.asarray(w1).T.astype(compute_dtype)                 # (H, H) in,out
    b1_p = jnp.asarray(b1).reshape(1, hidden).astype(jnp.float32)  # (1, H)
    w2_t = jnp.asarray(w2).T.astype(compute_dtype)                 # (H, V) in,out
    b2_p = jnp.asarray(b2).astype(jnp.float32)
    if v_pad != vocab:
        w2_t = jnp.pad(w2_t, ((0, 0), (0, v_pad - vocab)))
        b2_p = jnp.pad(b2_p, ((0, v_pad - vocab),))
    b2_p = b2_p.reshape(1, v_pad)
    return DecoderParams(w1_t, b1_p, w2_t, b2_p, vocab, tv)


def _decoder_kernel(x_ref, w1_ref, b1_ref, w2_ref, b2_ref, out_ref, h_ref,
                    *, tv: int, cache_h: bool, vocab_axis: int):
    # x_ref  : (TM, H)     compute dtype             -- tiled over rows
    # w1_ref : (H, H)      compute dtype, (in, out)  -- resident, single-buffered
    # b1_ref : (1, H)      f32                       -- resident
    # w2_ref : (H, TV)     compute dtype, (in, out)  -- tiled over vocab
    # b2_ref : (1, V_pad)  f32                       -- resident, sliced in-kernel
    # out_ref: (TM, TV)    out dtype
    # h_ref  : (TM, H)     VMEM scratch              -- hidden activation (bf16)
    j = pl.program_id(vocab_axis)

    def compute_h():
        acc = jnp.dot(x_ref[...], w1_ref[...],
                      preferred_element_type=jnp.float32)          # MXU, f32 acc
        h_ref[...] = jnp.tanh(acc + b1_ref[...]).astype(h_ref.dtype)

    if cache_h:
        # h computed at j == 0 and reused by later vocab tiles of the same row
        # tile.  REQUIRES the vocab axis to be "arbitrary" (sequential); do not
        # flip it to "parallel" in this mode.
        @pl.when(j == 0)
        def _():
            compute_h()
    else:
        # Decode path (vocab axis is the leading "parallel" one): recompute h
        # each tile; the extra flops hide under the W2 DMA at small M.
        compute_h()

    b2_tile = b2_ref[:, pl.ds(pl.multiple_of(j * tv, 128), tv)]
    acc2 = jnp.dot(h_ref[...], w2_ref[...],
                   preferred_element_type=jnp.float32)              # MXU, f32 acc
    out_ref[...] = (acc2 + b2_tile).astype(out_ref.dtype)


def _resident_spec(shape, single_buffer: bool) -> pl.BlockSpec:
    """BlockSpec pinned to block (0, 0); single-buffered when supported (the
    constant index_map makes the default second buffer dead VMEM)."""
    index_map = lambda a, b: (0,) * len(shape)
    if single_buffer:
        try:
            return pl.BlockSpec(shape, index_map, pipeline_mode=pl.Buffered(1))
        except (TypeError, AttributeError):   # older jax without pipeline_mode
            pass
    return pl.BlockSpec(shape, index_map)


@functools.partial(jax.jit,
                   static_argnames=("vocab", "tv", "tm", "out_dtype",
                                    "single_buffer_resident"))
def _decoder_forward_2d(x2d, w1_t, b1, w2_t, b2, *, vocab, tv, tm,
                        out_dtype, single_buffer_resident):
    m, hidden = x2d.shape
    v_pad = w2_t.shape[1]
    compute_dtype = w1_t.dtype
    cw = jnp.dtype(compute_dtype).itemsize
    out_dtype = x2d.dtype if out_dtype is None else out_dtype
    ow = jnp.dtype(out_dtype).itemsize

    vmem_cap = _vmem_capacity_bytes()
    budget = vmem_cap - 8 * _MIB          # headroom for Mosaic internals

    # Resident-W1 design: H*H*cw must fit in VMEM.
    # TODO(synk): K-tile W1 (or split into two pallas_calls) for hidden sizes
    # whose first-layer weight does not fit (e.g. H >= 8192 in bf16).
    if hidden * hidden * cw > int(0.7 * vmem_cap):
        raise NotImplementedError(
            f"hidden={hidden} first-layer weight does not fit VMEM-resident "
            f"({vmem_cap // _MIB} MiB per core).")

    # Row tile: multiple of 8.  Default 512 (past the v7x/v5e roofline knee),
    # 1024 when >= 96 MiB VMEM is available (v6e/v5e).  Larger TM directly
    # reduces W2 re-fetch traffic (W2 is streamed M_pad/TM times).
    if tm is None:
        tm = 1024 if vmem_cap >= 96 * _MIB else 512
    tm = max(8, min(_round_up(tm, 8), _round_up(m, 8)))

    def vmem_bytes(tm_, tv_):
        r = 1 if single_buffer_resident else 2
        return (r * hidden * hidden * cw        # W1 (resident)
                + r * hidden * 4                # b1 (resident)
                + r * v_pad * 4                 # b2 (resident)
                + 2 * tm_ * hidden * cw         # x tiles (double-buffered)
                + 2 * hidden * tv_ * cw         # W2 tiles (double-buffered)
                + 2 * tm_ * tv_ * ow            # out tiles (double-buffered)
                + tm_ * hidden * cw)            # h scratch

    while tm > 8 and vmem_bytes(tm, tv) > budget:
        tm = max(8, _round_up(tm // 2, 8))

    m_pad = _round_up(m, tm)
    if m_pad != m:
        x2d = jnp.pad(x2d, ((0, m_pad - m), (0, 0)))
    x2d = x2d.astype(compute_dtype)

    n_row_tiles = m_pad // tm
    n_vocab_tiles = v_pad // tv

    # Decode-like shapes: one row tile would leave the parallel rows axis with
    # a single iteration (second v7x TensorCore idle).  The kernel is then
    # HBM-bound streaming W2 (~m flops/byte), so recomputing h per vocab tile
    # is free: make the vocab axis the leading "parallel" one instead.
    vocab_parallel = (n_row_tiles == 1 and n_vocab_tiles > 1
                      and m_pad * (hidden + tv) <= 128 * tv)
    if vocab_parallel:
        grid = (n_vocab_tiles, n_row_tiles)
        x_map = lambda j, i: (i, 0)
        w2_map = lambda j, i: (0, j)
        out_map = lambda j, i: (i, j)
        vocab_axis, cache_h = 0, False
    else:
        grid = (n_row_tiles, n_vocab_tiles)
        x_map = lambda i, j: (i, 0)
        w2_map = lambda i, j: (0, j)
        out_map = lambda i, j: (i, j)
        vocab_axis, cache_h = 1, True

    vmem_limit = int(min(max(vmem_bytes(tm, tv) * 1.2, 32 * _MIB), budget))

    kernel = functools.partial(_decoder_kernel, tv=tv, cache_h=cache_h,
                               vocab_axis=vocab_axis)

    # NOTE: W2/out could additionally use pipeline_mode=pl.Buffered(3) where
    # VMEM allows (smooths the longer j==0 step); left at the default depth.
    out2d = pl.pallas_call(
        kernel,
        out_shape=jax.ShapeDtypeStruct((m_pad, v_pad), out_dtype),
        grid_spec=pltpu.PrefetchScalarGridSpec(
            num_scalar_prefetch=0,
            grid=grid,
            in_specs=[
                pl.BlockSpec((tm, hidden), x_map),                          # X
                _resident_spec((hidden, hidden), single_buffer_resident),   # W1
                _resident_spec((1, hidden), single_buffer_resident),        # b1
                pl.BlockSpec((hidden, tv), w2_map),                         # W2
                _resident_spec((1, v_pad), single_buffer_resident),         # b2
            ],
            out_specs=pl.BlockSpec((tm, tv), out_map),
            scratch_shapes=[pltpu.VMEM((tm, hidden), compute_dtype)],       # h
        ),
        compiler_params=pltpu.CompilerParams(
            dimension_semantics=("parallel", "arbitrary"),
            vmem_limit_bytes=vmem_limit,
        ),
    )(x2d, w1_t, b1, w2_t, b2)

    if m_pad != m or v_pad != vocab:
        out2d = out2d[:m, :vocab]
    return out2d


def simple_decoder_forward(x, params: DecoderParams, *, tm: Optional[int] = None,
                           out_dtype=None, single_buffer_resident: bool = True):
    """SimpleDecoder forward: tanh(x @ W1^T + b1) @ W2^T + b2.

    x: (..., hidden) -> (..., vocab) in `out_dtype` (default: x.dtype).
    `params` must come from prepare_decoder_params (one-time weight prep).
    """
    hidden = x.shape[-1]
    lead = x.shape[:-1]
    m = math.prod(lead) if lead else 1
    out2d = _decoder_forward_2d(
        x.reshape(m, hidden), params.w1_t, params.b1, params.w2_t, params.b2,
        vocab=params.vocab, tv=params.tv, tm=tm, out_dtype=out_dtype,
        single_buffer_resident=single_buffer_resident)
    return out2d.reshape(*lead, params.vocab)


def init_params(key, hidden_size, max_vocab_size):
    """Deterministic PyTorch-Linear-style init (uniform +/- 1/sqrt(fan_in))."""
    k1, k2, k3, k4 = jax.random.split(key, 4)
    bound = 1.0 / jnp.sqrt(hidden_size)
    w1 = jax.random.uniform(k1, (hidden_size, hidden_size), jnp.float32, -bound, bound)
    b1 = jax.random.uniform(k2, (hidden_size,), jnp.float32, -bound, bound)
    w2 = jax.random.uniform(k3, (max_vocab_size, hidden_size), jnp.float32, -bound, bound)
    b2 = jax.random.uniform(k4, (max_vocab_size,), jnp.float32, -bound, bound)
    return w1, b1, w2, b2


if __name__ == "__main__":
    # Small shapes that exercise row/vocab tiling AND padding (m=14 -> 16 with
    # tm=8; vocab=250 -> 384 with tv=128), plus a decode-shaped second call.
    batch, seq, hidden, vocab = 2, 7, 32, 250

    key = jax.random.PRNGKey(0)
    kx, kp = jax.random.split(key)
    x = jax.random.normal(kx, (batch, seq, hidden), jnp.float32)
    w1, b1, w2, b2 = init_params(kp, hidden, vocab)

    # One-time weight prep (cast / transpose / pad hoisted out of the forward).
    params = prepare_decoder_params(w1, b1, w2, b2, tv=128)

    def run(x_, **kw):
        # pl.Buffered(1) (single-buffered resident weights) is a newer knob;
        # fall back to default double-buffering if this build rejects it.
        try:
            return simple_decoder_forward(x_, params, **kw)
        except Exception:
            return simple_decoder_forward(x_, params,
                                          single_buffer_resident=False, **kw)

    # Reference with the same bf16-input / f32-accumulation recipe.
    def ref_bf16(x_):
        h = jnp.tanh(jnp.dot(x_.astype(jnp.bfloat16), w1.T.astype(jnp.bfloat16),
                             preferred_element_type=jnp.float32) + b1)
        return jnp.dot(h.astype(jnp.bfloat16), w2.T.astype(jnp.bfloat16),
                       preferred_element_type=jnp.float32) + b2

    # 1) Prefill-like: 2 row tiles x 3 vocab tiles (h-cache / "arbitrary" path).
    out = jax.block_until_ready(run(x, tm=8))
    assert out.shape == (batch, seq, vocab)
    assert out.dtype == x.dtype
    assert jnp.allclose(out, ref_bf16(x), atol=1e-2, rtol=1e-2)
    # Loose sanity check against the full-f32 math of the original module.
    ref_f32 = jnp.tanh(x @ w1.T + b1) @ w2.T + b2
    assert jnp.allclose(out, ref_f32, atol=1e-1, rtol=1e-1)

    # 2) Decode-like: single row tile -> vocab-parallel path, bf16 logits knob.
    xd = x[:1, :4]
    out_d = jax.block_until_ready(run(xd, tm=8, out_dtype=jnp.bfloat16))
    assert out_d.shape == (1, 4, vocab)
    assert out_d.dtype == jnp.bfloat16
    assert jnp.allclose(out_d.astype(jnp.float32), ref_bf16(xd),
                        atol=5e-2, rtol=5e-2)

    print("KERNEL_OK")
</pallas_src>

<mosaic_0001>
module attributes {stable_mosaic.version = 11 : i64} {
  func.func @_decoder_kernel(%arg0: i32, %arg1: i32, %arg2: memref<8x32xbf16, #tpu.memory_space<vmem>>, %arg3: memref<32x32xbf16, #tpu.memory_space<vmem>>, %arg4: memref<1x32xf32, #tpu.memory_space<vmem>>, %arg5: memref<32x128xbf16, #tpu.memory_space<vmem>>, %arg6: memref<1x256xf32, #tpu.memory_space<vmem>>, %arg7: memref<8x128xf32, #tpu.memory_space<vmem>>, %arg8: memref<8x32xbf16, #tpu.memory_space<vmem>>) attributes {dimension_semantics = [#tpu.dimension_semantics<parallel>, #tpu.dimension_semantics<arbitrary>], iteration_bounds = array<i64: 2, 2>, scalar_prefetch = 0 : i64, scratch_operands = 1 : i64, tpu.core_type = #tpu.core_type<tc>, window_params = [{transform_indices = @transform_0, window_bounds = array<i64: 8, 32>}, {pipeline_mode = #tpu.pipeline_mode<synchronous>, transform_indices = @transform_1, window_bounds = array<i64: 32, 32>}, {pipeline_mode = #tpu.pipeline_mode<synchronous>, transform_indices = @transform_2, window_bounds = array<i64: 1, 32>}, {transform_indices = @transform_3, window_bounds = array<i64: 32, 128>}, {pipeline_mode = #tpu.pipeline_mode<synchronous>, transform_indices = @transform_4, window_bounds = array<i64: 1, 256>}, {transform_indices = @transform_5, window_bounds = array<i64: 8, 128>}]} {
    %c0_i32 = arith.constant 0 : i32
    %0 = arith.cmpi eq, %arg1, %c0_i32 : i32
    %1 = arith.extui %0 : i1 to i32
    %c0_i32_0 = arith.constant 0 : i32
    %2 = arith.cmpi ne, %1, %c0_i32_0 : i32
    scf.if %2 {
      %c0_7 = arith.constant 0 : index
      %c0_8 = arith.constant 0 : index
      %13 = vector.load %arg2[%c0_7, %c0_8] : memref<8x32xbf16, #tpu.memory_space<vmem>>, vector<8x32xbf16>
      %c0_9 = arith.constant 0 : index
      %c0_10 = arith.constant 0 : index
      %14 = vector.load %arg3[%c0_9, %c0_10] : memref<32x32xbf16, #tpu.memory_space<vmem>>, vector<32x32xbf16>
      %cst_11 = arith.constant dense<0.000000e+00> : vector<8x32xf32>
      %15 = tpu.matmul %13, %14, %cst_11 {dimension_numbers = #tpu.dot_dimension_numbers<[1], [0], [0], [1], [0, 0, 1, 1], [], []>} : vector<8x32xbf16>, vector<32x32xbf16>, vector<8x32xf32> -> vector<8x32xf32>
      %c0_12 = arith.constant 0 : index
      %c0_13 = arith.constant 0 : index
      %16 = vector.load %arg4[%c0_12, %c0_13] : memref<1x32xf32, #tpu.memory_space<vmem>>, vector<1x32xf32>
      %17 = vector.broadcast %16 : vector<1x32xf32> to vector<8x32xf32>
      %18 = arith.addf %15, %17 : vector<8x32xf32>
      %19 = math.tanh %18 : vector<8x32xf32>
      %20 = arith.truncf %19 : vector<8x32xf32> to vector<8x32xbf16>
      %c0_14 = arith.constant 0 : index
      %c0_15 = arith.constant 0 : index
      %21 = vector.load %arg8[%c0_14, %c0_15] : memref<8x32xbf16, #tpu.memory_space<vmem>>, vector<8x32xbf16>
      tpu.vector_store %arg8[%c0_14, %c0_15], %20 {strides = array<i32>} : memref<8x32xbf16, #tpu.memory_space<vmem>>, vector<8x32xbf16>,
    } else {
    }
    %c128_i32 = arith.constant 128 : i32
    %3 = arith.muli %arg1, %c128_i32 : i32
    %4 = tpu.assume_multiple %3, 128 : i32
    %c0 = arith.constant 0 : index
    %5 = arith.index_cast %4 : i32 to index
    %6 = vector.load %arg6[%c0, %5] : memref<1x256xf32, #tpu.memory_space<vmem>>, vector<1x128xf32>
    %c0_1 = arith.constant 0 : index
    %c0_2 = arith.constant 0 : index
    %7 = vector.load %arg8[%c0_1, %c0_2] : memref<8x32xbf16, #tpu.memory_space<vmem>>, vector<8x32xbf16>
    %c0_3 = arith.constant 0 : index
    %c0_4 = arith.constant 0 : index
    %8 = vector.load %arg5[%c0_3, %c0_4] : memref<32x128xbf16, #tpu.memory_space<vmem>>, vector<32x128xbf16>
    %cst = arith.constant dense<0.000000e+00> : vector<8x128xf32>
    %9 = tpu.matmul %7, %8, %cst {dimension_numbers = #tpu.dot_dimension_numbers<[1], [0], [0], [1], [0, 0, 1, 1], [], []>} : vector<8x32xbf16>, vector<32x128xbf16>, vector<8x128xf32> -> vector<8x128xf32>
    %10 = vector.broadcast %6 : vector<1x128xf32> to vector<8x128xf32>
    %11 = arith.addf %9, %10 : vector<8x128xf32>
    %c0_5 = arith.constant 0 : index
    %c0_6 = arith.constant 0 : index
    %12 = vector.load %arg7[%c0_5, %c0_6] : memref<8x128xf32, #tpu.memory_space<vmem>>, vector<8x128xf32>
    tpu.vector_store %arg7[%c0_5, %c0_6], %11 {strides = array<i32>} : memref<8x128xf32, #tpu.memory_space<vmem>>, vector<8x128xf32>,
    return
  }
  func.func @transform_0(%arg0: i32, %arg1: i32) -> (i32, i32) {
    %c0_i32 = arith.constant 0 : i32
    %c0_i32_0 = arith.constant 0 : i32
    return %arg0, %c0_i32 : i32, i32
  }
  func.func @transform_1(%arg0: i32, %arg1: i32) -> (i32, i32) {
    %c0_i32 = arith.constant 0 : i32
    %c0_i32_0 = arith.constant 0 : i32
    %c0_i32_1 = arith.constant 0 : i32
    return %c0_i32, %c0_i32_0 : i32, i32
  }
  func.func @transform_2(%arg0: i32, %arg1: i32) -> (i32, i32) {
    %c0_i32 = arith.constant 0 : i32
    %c0_i32_0 = arith.constant 0 : i32
    %c0_i32_1 = arith.constant 0 : i32
    return %c0_i32, %c0_i32_0 : i32, i32
  }
  func.func @transform_3(%arg0: i32, %arg1: i32) -> (i32, i32) {
    %c0_i32 = arith.constant 0 : i32
    %c0_i32_0 = arith.constant 0 : i32
    return %c0_i32, %arg1 : i32, i32
  }
  func.func @transform_4(%arg0: i32, %arg1: i32) -> (i32, i32) {
    %c0_i32 = arith.constant 0 : i32
    %c0_i32_0 = arith.constant 0 : i32
    %c0_i32_1 = arith.constant 0 : i32
    return %c0_i32, %c0_i32_0 : i32, i32
  }
  func.func @transform_5(%arg0: i32, %arg1: i32) -> (i32, i32) {
    %c0_i32 = arith.constant 0 : i32
    return %arg0, %arg1 : i32, i32
  }
}

module attributes {stable_mosaic.version = 11 : i64} {
  func.func @_decoder_kernel(%arg0: i32, %arg1: i32, %arg2: memref<8x32xbf16, #tpu.memory_space<vmem>>, %arg3: memref<32x32xbf16, #tpu.memory_space<vmem>>, %arg4: memref<1x32xf32, #tpu.memory_space<vmem>>, %arg5: memref<32x128xbf16, #tpu.memory_space<vmem>>, %arg6: memref<1x256xf32, #tpu.memory_space<vmem>>, %arg7: memref<8x128xf32, #tpu.memory_space<vmem>>, %arg8: memref<8x32xbf16, #tpu.memory_space<vmem>>) attributes {dimension_semantics = [#tpu.dimension_semantics<parallel>, #tpu.dimension_semantics<arbitrary>], iteration_bounds = array<i64: 2, 2>, scalar_prefetch = 0 : i64, scratch_operands = 1 : i64, tpu.core_type = #tpu.core_type<tc>, window_params = [{transform_indices = @transform_0, window_bounds = array<i64: 8, 32>}, {pipeline_mode = #tpu.pipeline_mode<synchronous>, transform_indices = @transform_1, window_bounds = array<i64: 32, 32>}, {pipeline_mode = #tpu.pipeline_mode<synchronous>, transform_indices = @transform_2, window_bounds = array<i64: 1, 32>}, {transform_indices = @transform_3, window_bounds = array<i64: 32, 128>}, {pipeline_mode = #tpu.pipeline_mode<synchronous>, transform_indices = @transform_4, window_bounds = array<i64: 1, 256>}, {transform_indices = @transform_5, window_bounds = array<i64: 8, 128>}]} {
    %c0_i32 = arith.constant 0 : i32
    %0 = arith.cmpi eq, %arg1, %c0_i32 : i32
    %1 = arith.extui %0 : i1 to i32
    %c0_i32_0 = arith.constant 0 : i32
    %2 = arith.cmpi ne, %1, %c0_i32_0 : i32
    scf.if %2 {
      %c0_7 = arith.constant 0 : index
      %c0_8 = arith.constant 0 : index
      %13 = vector.load %arg2[%c0_7, %c0_8] : memref<8x32xbf16, #tpu.memory_space<vmem>>, vector<8x32xbf16>
      %c0_9 = arith.constant 0 : index
      %c0_10 = arith.constant 0 : index
      %14 = vector.load %arg3[%c0_9, %c0_10] : memref<32x32xbf16, #tpu.memory_space<vmem>>, vector<32x32xbf16>
      %cst_11 = arith.constant dense<0.000000e+00> : vector<8x32xf32>
      %15 = tpu.matmul %13, %14, %cst_11 {dimension_numbers = #tpu.dot_dimension_numbers<[1], [0], [0], [1], [0, 0, 1, 1], [], []>} : vector<8x32xbf16>, vector<32x32xbf16>, vector<8x32xf32> -> vector<8x32xf32>
      %c0_12 = arith.constant 0 : index
      %c0_13 = arith.constant 0 : index
      %16 = vector.load %arg4[%c0_12, %c0_13] : memref<1x32xf32, #tpu.memory_space<vmem>>, vector<1x32xf32>
      %17 = vector.broadcast %16 : vector<1x32xf32> to vector<8x32xf32>
      %18 = arith.addf %15, %17 : vector<8x32xf32>
      %19 = math.tanh %18 : vector<8x32xf32>
      %20 = arith.truncf %19 : vector<8x32xf32> to vector<8x32xbf16>
      %c0_14 = arith.constant 0 : index
      %c0_15 = arith.constant 0 : index
      %21 = vector.load %arg8[%c0_14, %c0_15] : memref<8x32xbf16, #tpu.memory_space<vmem>>, vector<8x32xbf16>
      tpu.vector_store %arg8[%c0_14, %c0_15], %20 {strides = array<i32>} : memref<8x32xbf16, #tpu.memory_space<vmem>>, vector<8x32xbf16>,
    } else {
    }
    %c128_i32 = arith.constant 128 : i32
    %3 = arith.muli %arg1, %c128_i32 : i32
    %4 = tpu.assume_multiple %3, 128 : i32
    %c0 = arith.constant 0 : index
    %5 = arith.index_cast %4 : i32 to index
    %6 = vector.load %arg6[%c0, %5] : memref<1x256xf32, #tpu.memory_space<vmem>>, vector<1x128xf32>
    %c0_1 = arith.constant 0 : index
    %c0_2 = arith.constant 0 : index
    %7 = vector.load %arg8[%c0_1, %c0_2] : memref<8x32xbf16, #tpu.memory_space<vmem>>, vector<8x32xbf16>
    %c0_3 = arith.constant 0 : index
    %c0_4 = arith.constant 0 : index
    %8 = vector.load %arg5[%c0_3, %c0_4] : memref<32x128xbf16, #tpu.memory_space<vmem>>, vector<32x128xbf16>
    %cst = arith.constant dense<0.000000e+00> : vector<8x128xf32>
    %9 = tpu.matmul %7, %8, %cst {dimension_numbers = #tpu.dot_dimension_numbers<[1], [0], [0], [1], [0, 0, 1, 1], [], []>} : vector<8x32xbf16>, vector<32x128xbf16>, vector<8x128xf32> -> vector<8x128xf32>
    %10 = vector.broadcast %6 : vector<1x128xf32> to vector<8x128xf32>
    %11 = arith.addf %9, %10 : vector<8x128xf32>
    %c0_5 = arith.constant 0 : index
    %c0_6 = arith.constant 0 : index
    %12 = vector.load %arg7[%c0_5, %c0_6] : memref<8x128xf32, #tpu.memory_space<vmem>>, vector<8x128xf32>
    tpu.vector_store %arg7[%c0_5, %c0_6], %11 {strides = array<i32>} : memref<8x128xf32, #tpu.memory_space<vmem>>, vector<8x128xf32>,
    return
  }
  func.func @transform_0(%arg0: i32, %arg1: i32) -> (i32, i32) {
    %c0_i32 = arith.constant 0 : i32
    %c0_i32_0 = arith.constant 0 : i32
    return %arg0, %c0_i32 : i32, i32
  }
  func.func @transform_1(%arg0: i32, %arg1: i32) -> (i32, i32) {
    %c0_i32 = arith.constant 0 : i32
    %c0_i32_0 = arith.constant 0 : i32
    %c0_i32_1 = arith.constant 0 : i32
    return %c0_i32, %c0_i32_0 : i32, i32
  }
  func.func @transform_2(%arg0: i32, %arg1: i32) -> (i32, i32) {
    %c0_i32 = arith.constant 0 : i32
    %c0_i32_0 = arith.constant 0 : i32
    %c0_i32_1 = arith.constant 0 : i32
    return %c0_i32, %c0_i32_0 : i32, i32
  }
  func.func @transform_3(%arg0: i32, %arg1: i32) -> (i32, i32) {
    %c0_i32 = arith.constant 0 : i32
    %c0_i32_0 = arith.constant 0 : i32
    return %c0_i32, %arg1 : i32, i32
  }
  func.func @transform_4(%arg0: i32, %arg1: i32) -> (i32, i32) {
    %c0_i32 = arith.constant 0 : i32
    %c0_i32_0 = arith.constant 0 : i32
    %c0_i32_1 = arith.constant 0 : i32
    return %c0_i32, %c0_i32_0 : i32, i32
  }
  func.func @transform_5(%arg0: i32, %arg1: i32) -> (i32, i32) {
    %c0_i32 = arith.constant 0 : i32
    return %arg0, %arg1 : i32, i32
  }
}

</mosaic_0001>

<bundles_post_ra>
// kernel: _decoder_forward_2d.1
= control target key start
LH: loop header
LB: loop body
LE: loop exit
PB: predicated region body
PF: predicated region fallthrough
CT: control target
= control target key end

     0   :  { %s1058_s0 = inlined_call_operand.vmem [shape: bf16[16,32], index: 0, kind: input, shape index: {}]   ;;  %s1059_s1 = inlined_call_operand.vmem [shape: bf16[32,32], index: 1, kind: input, shape index: {}]   ;;  %s1060_s2 = inlined_call_operand.vmem [shape: f32[1,32], index: 2, kind: input, shape index: {}]   ;;  %s1061_s3 = inlined_call_operand.vmem [shape: bf16[32,256], index: 3, kind: input, shape index: {}]   ;;  %s1062_s4 = inlined_call_operand.vmem [shape: f32[1,256], index: 4, kind: input, shape index: {}]   ;;  %s1063_s5 = inlined_call_operand.hbm [shape: f32[16,256], index: 5, kind: output, shape index: {}]  }
   0x1   :  { %1067 = sst [smem:[#allocation9_spill]] %s1058_s0 }
   0x2   :  { %1068 = sst [smem:[#allocation10_spill]] %s1061_s3 }
   0x3   :  { %10 = vsyncpa [#allocation5], 0 }
   0x4   :  { %12 = vsyncpa [#allocation5 + $0x1], 0  ;;  %s855_s18 = smov 0   ;;  %s857_s19 = smov 0  }
   0x5   :  { %s859_s20 = smov 0   ;;  %s861_s21 = smov 0  }
   0x6   :  { %s863_s22 = smov 0   ;;  %s865_s23 = smov 0  }
   0x7   :  { %s867_s24 = smov 0   ;;  %s869_s25 = smov 0  }
   0x8   :  { %s871_s26 = smov 0   ;;  %s873_s27 = smov 0  }
   0x9 LB: > { %s564_s28 = sadd.s32 4294967295, %s818_s27   ;;  %s565_s29 = sadd.s32 4294967294, %s818_s27   ;;  %s818_s27 = sphi %s873_s27, %s18_s27   ;;  %s814_s26 = sphi %s871_s26, %s1087_s26   ;;  %s810_s25 = sphi %s869_s25, %s1086_s25   ;;  %s806_s24 = sphi %s867_s24, %s1085_s24   ;;  %s802_s23 = sphi %s865_s23, %s1084_s23   ;;  %s798_s22 = sphi %s863_s22, %s1083_s22   ;;  %s794_s21 = sphi %s861_s21, %s1082_s21   ;;  %s790_s20 = sphi %s859_s20, %s1081_s20   ;;  %s786_s19 = sphi %s857_s19, %s1080_s19   ;;  %s782_s18 = sphi %s855_s18, %s1079_s18  }
   0xa   : > { %s27_s30 = sadd.s32 1, %s810_s25  ;;  %s30_s6 = sadd.s32 1, %s814_s26 }
   0xb   : > { %p28_p0 = scmp.ge.s32.totalorder %s27_s30, 2  ;;  %s105_s7 = sadd.s32 1, %s798_s22 }
   0xc   : > { %p112_p1 = scmp.ne.s32.totalorder %s798_s22, %s794_s21  ;;  %p113_p2 = scmp.eq.s32.totalorder %s818_s27, 0 }
   0xd   : > { %s1089_s30 = smov (%p28_p0, %s27_s30), 0  ;;  %s1091_s6 = smov (!%p28_p0, %s30_s6), %s814_s26 }
   0xe   : > { %1069 = sst [smem:[#allocation7_spill]] %s1089_s30  ;;  %s102_s8 = ssub.s32 %s810_s25, %s1089_s30 }
   0xf   : > { %p918_p3 = por %p113_p2, %p112_p1  ;;  %p32_p4 = scmp.ge.s32.totalorder %s1091_s6, 2 }
  0x10   : > { %p103_p5 = scmp.eq.s32.totalorder %s102_s8, 0  ;;  %s154_s10 = sadd.s32 1, %s790_s20 }
  0x11   : > { %p164_p6 = scmp.ne.s32.totalorder %s790_s20, %s786_s19  ;;  %s1093_s6 = smov (%p32_p4, %s1091_s6), 0 }
  0x12   : > { %1071 = sst [smem:[#allocation8_spill]] %s1093_s6  ;;  %s149_s12 = ssub.s32 %s814_s26, %s1093_s6 }
  0x13   : > { %s928_s11 = scalar_select %p103_p5, %s798_s22, %s105_s7  }
  0x14   : > { %p165_p7 = scmp.eq.s32.totalorder %s564_s28, 3  ;;  %s151_s13 = sor.u32 %s149_s12, %s102_s8 }
  0x15   : > { %p170_p8 = scmp.ne.s32.totalorder %s786_s19, %s782_s18  ;;  %p152_p9 = scmp.eq.s32.totalorder %s151_s13, 0 }
  0x16   : > { %p934_p10 = por %p165_p7, %p164_p6  ;;  %p171_p11 = scmp.eq.s32.totalorder %s565_s29, 3 }
  0x17   : > { %s939_s15 = scalar_select %p152_p9, %s790_s20, %s154_s10  }
  0x18   : > { %p941_p12 = por %p171_p11, %p170_p8  ;;  %p567_p13 = scmp.ge.s32.totalorder %s818_s27, 4 }
  0x1a   : > { %196 = sbr.rel (%p567_p13) target bundleno = 45 (0x2d), region = 28 }
  0x21   : > { %206 = sbr.rel (!%p918_p3) target bundleno = 45 (0x2d), region = 36  ;;  %s208_s17 = sand.u32 (%p918_p3), 1, %s798_s22  }
  0x22   : > { %s569_s28 = sshll.u32 (%p918_p3), %s810_s25, 2  ;;  %s568_s7 = sshll.u32 (%p918_p3), %s208_s17, 4 }
  0x23   : > { %s1074_s3 = sld [smem:[#allocation10_spill]] (%p918_p3)  ;;  %s210_s10 = scalar_lea.vmem (%p918_p3), [#allocation3], %s568_s7 }
  0x29   : > { %s212_s29 = scalar_lea.vmem %s1074_s3, %s569_s28 }
  0x2a   : > { %v228_v0 = vld [vmem:[%s212_s29] sm:$0xf]  ;;  %v230_v1 = vld [vmem:[%s212_s29 + $0x8] sm:$0xf]  ;;  %v232_v2 = vld [vmem:[%s212_s29 + $0x10] sm:$0xf] }
  0x2b   : > { %229 = vst [vmem:[%s210_s10] sm:$0xf] %v228_v0  ;;  %231 = vst [vmem:[%s210_s10 + $0x4] sm:$0xf] %v230_v1  ;;  %v234_v3 = vld [vmem:[%s212_s29 + $0x18] sm:$0xf] }
  0x2c   : > { %233 = vst [vmem:[%s210_s10 + $0x8] sm:$0xf] %v232_v2  ;;  %235 = vst [vmem:[%s210_s10 + $0xc] sm:$0xf] %v234_v3 }
  0x2d PF: > { %p570_p0 = scmp.ge.s32.totalorder %s818_s27, 1  ;;  %p265_p1 = scmp.lt.s32.totalorder %s818_s27, 5 }
  0x2f   : > { %p266_p2 = pnand %p570_p0, %p265_p1 }
  0x30   : > { %s272_s9 = sand.u32 (!%p266_p2), 1, %s794_s21   ;;  %s1065_s13 = sand.u32 (!%p266_p2), 1, %s786_s19  }
  0x31   : > { %269 = sbr.rel (%p266_p2) target bundleno = 531 (0x213), region = 77  ;;  %s957_s17 = sshll.u32 (!%p266_p2), %s272_s9, 4 }
  0x32   : > { %s961_s28 = sshll.u32 (!%p266_p2), %s1065_s13, 3  ;;  %p303_p3 = scmp.lt.s32.totalorder (!%p266_p2), %s806_s24, 1 }
  0x33   : > { %s1075_s0 = sld [smem:[#allocation9_spill]] (!%p266_p2)  ;;  %s274_s3 = scalar_lea.vmem (!%p266_p2), [#allocation3], %s957_s17 }
  0x34   : > { %s302_s6 = scalar_lea.vmem (!%p266_p2), [#allocation4], %s961_s28  ;;  %p574_p4 = scmp.ne.s32.totalorder (!%p266_p2), %s802_s23, 0 }
  0x38   : > { %s304_s7 = scalar_select %p303_p3, %s806_s24, 1 }
  0x39   : > { %311 = sbr.rel (%p574_p4) target bundleno = 294 (0x126), region = 85  ;;  %v702_v4 = vld [vmem:[%s1059_s1] sm:$0xff] (!%p574_p4)   ;;  %v820_v5 = vmov (!%p574_p4), 0.0   ;;  %v703_v6 = vld [vmem:[%s1059_s1 + $0x8] sm:$0xff] (!%p574_p4)   ;;  %vm821_vm0 = vmmov (!%p574_p4), 0   ;;  %vm336_vm1 = vcmask (!%p574_p4), 261120  }
  0x3a   : > { %s573_s8 = sshll.u32 %s304_s7, 2  ;;  %595 = vmatprep.subr.bf16.mxu0 (!%p574_p4), %v820_v5  ;;  %599 = vmatprep.mubr.msk.bf16.mxu0 (!%p574_p4), %vm821_vm0, %v820_v5  ;;  %v575_v8 = vld [vmem:[%s1060_s2] ss:$0 sm:$0xff] (!%p574_p4)  ;;  %vm382_vm2 = vcmask (!%p574_p4), 257024  }
  0x3b   : > { %s306_s10 = scalar_lea.vmem %s1075_s0, %s573_s8  ;;  %596 = vmatpush3.bf16.msra.mxu0 (!%p574_p4), %v702_v4 }
  0x3c   : > { %597 = vmatprep.subr.bf16.mxu0 (!%p574_p4), %v820_v5  ;;  %v312_v7 = vld [vmem:[%s306_s10] sm:$0xf] (!%p574_p4) }
  0x3f   : > { %598 = vmatpush3.bf16.msra.mxu0 (!%p574_p4), %v703_v6 }
  0x42   : > { %600 = vmatmul.mubr.msk.bf16.vlgmr.msra.gmra.mrb[0].mxu0 %vm336_vm1, %v312_v7 }
 0x115   : > { %v374_v9 = vpop.f32.mrb[0].mxu0 }
 0x116   : > { %v375_v10 = vadd.f32 %v575_v8, %v374_v9  ;;  %v601_v11 = vpop.f32.mrb[1].mxu0 }
 0x117   : > { %v377_v12 = vpop.f32.mrb[2].mxu0 }
 0x118   : > { %704 = vtanh.f32 %v375_v10  ;;  %v602_v13 = vpop.f32.mrb[3].mxu0 }
 0x122   : > { %v705_v14 = vpop.eup %704 }
 0x123   : > { %v381_v15 = vpack.c.bf16 %v705_v14, %v705_v14 }
 0x125   : > { %383 = vst.msk [vmem:[#allocation2] sm:$0xf] %vm382_vm2, %v381_v15 }
 0x126 PF: > { %v706_v16 = vld [vmem:[%s274_s3] sm:$0xff]   ;;  %v822_v17 = vmov 0.0   ;;  %v707_v18 = vld [vmem:[%s274_s3 + $0x8] sm:$0xff]   ;;  %vm823_vm3 = vmmov 0   ;;  %vm412_vm4 = vcmask 261120   ;;  %s579_s30 = sshll.u32 %s802_s23, 7 }
 0x127   : > { %603 = vmatprep.subr.bf16.mxu0 %v822_v17  ;;  %607 = vmatprep.mubr.msk.bf16.mxu0 %vm823_vm3, %v822_v17  ;;  %s385_s13 = sshra.s32 %s579_s30, 7  ;;  %s585_s12 = sshll.u32 %s806_s24, 1 }
 0x128   : > { %604 = vmatpush3.bf16.msra.mxu0 %v706_v16  ;;  %s387_s21 = scalar_lea.vmem %s1062_s4, %s385_s13  ;;  %s469_s17 = sadd.s32 %s802_s23, %s585_s12 }
 0x129   : > { %605 = vmatprep.subr.bf16.mxu0 %v822_v17  ;;  %v580_v20 = vld [vmem:[%s387_s21] ss:$0 sm:$0xff]  ;;  %s586_s3 = sshll.u32 %s469_s17, 7  ;;  %s473_s9 = sshll.u32 %s302_s6, 4  ;;  %s997_s9 = int_to_ptr.vmem [resolvable:$true] %s473_s9 }
 0x12a   : > { %s995_s0 = scalar_lea.hbm %s1063_s5, %s586_s3  ;;  %s1076_s23 = sand.u32 1, %s786_s19  }
 0x12b   : > { %s458_s24 = scalar_lea.sflag [#allocation5], %s1076_s23  ;;  %s708_s30 = scalar_lea.vmem %s997_s9, 128 }
 0x12c   : > { %606 = vmatpush3.bf16.msra.mxu0 %v707_v18  ;;  %v389_v19 = vld [vmem:[#allocation2] sm:$0xf]  ;;  %p709_p5 = scmp.ne.s32.totalorder %s997_s9, %s708_s30  ;;  %s824_s13 = smov [#allocation4]  }
 0x12d   : > { %s712_s12 = sshll.u32 %s824_s13, 4  ;;  %s713_s12 = int_to_ptr.vmem [resolvable:$false] %s712_s12 }
 0x12e   : > { %p710_p6 = pnand %p709_p5, %p934_p10  ;;  %s714_s29 = scalar_lea.vmem %s713_s12, 256 }
 0x12f   : > { %608 = vmatmul.mubr.msk.bf16.vlgmr.msra.gmra.mrb[0].mxu0 %vm412_vm4, %v389_v19  ;;  %p715_p8 = scmp.lt.s32.totalorder %s997_s9, %s713_s12  ;;  %p716_p9 = scmp.lt.s32.totalorder %s714_s29, %s708_s30 }
 0x130   : > { %p711_p7 = pneg %p710_p6 }
 0x131   : > { %p717_p11 = por %p716_p9, %p715_p8 }
 0x133   : > { %p718_p13 = pnand %p717_p11, %p711_p7 }
 0x202   : > { %v450_v21 = vpop.f32.mrb[0].mxu0 }
 0x203   : > { %v451_v22 = vadd.f32 %v580_v20, %v450_v21  ;;  %v609_v23 = vpop.f32.mrb[1].mxu0 }
 0x204   : > { %v453_v24 = vpop.f32.mrb[2].mxu0 }
 0x205   : > { %456 = vst [vmem:[%s302_s6] sm:$0xff] %v451_v22  ;;  %v610_v25 = vpop.f32.mrb[3].mxu0 }
 0x206   : > { %721 = shalt.err (!%p718_p13)
}
 0x207   : > { %s722_s6 = scalar_lea.hbm %s995_s0, 128  ;;  %s726_s21 = scalar_lea.hbm %s1063_s5, 512 }
 0x208   : > { %p723_p0 = scmp.ne.s32.totalorder %s995_s0, %s722_s6  ;;  %p727_p3 = scmp.lt.u32.totalorder %s995_s0, %s1063_s5 }
 0x209   : > { %p728_p4 = scmp.lt.u32.totalorder %s726_s21, %s722_s6  ;;  %p730_p6 = scmp.lt.u32.totalorder %s722_s6, %s995_s0 }
 0x20a   : > { %p724_p1 = pnand %p723_p0, %p934_p10 }
 0x20b   : > { %p729_p5 = por %p728_p4, %p727_p3 }
 0x20c   : > { %p725_p2 = pneg %p724_p1 }
 0x20d   : > { %p731_p7 = por %p730_p6, %p729_p5 }
 0x20f   : > { %p732_p8 = pnand %p731_p7, %p725_p2 }
 0x211   : > { %735 = shalt.err (!%p732_p8)
}
 0x212   : > { %611 = dma.vmem_to_hbm [thread:$0]  (%p934_p10), %s997_s9, 128, %s995_s0, %s458_s24  }
 0x213 PF: > { %p617_p9 = scmp.ge.s32.totalorder %s818_s27, 2  ;;  %s485_s7 = sand.u32 1, %s782_s18  }
 0x214   : > { %s486_s8 = scalar_lea.sflag [#allocation5], %s485_s7 }
 0x215   : > { %p614_p11 = pnand %p617_p9, %p941_p12 }
 0x217   : > { %777 = dma.done.wait (!%p614_p11), %s486_s8, 128  }
 0x218   : > { %779 = vsyncadd (!%p614_p11), %s486_s8, 4294967168  ;;  %s18_s27 = sadd.s32 1, %s818_s27   ;;  %s1077_s0 = sld [smem:[#allocation7_spill]] }
 0x219   : > { %p15_p13 = scmp.ge.s32.totalorder %s18_s27, 6   ;;  %s1078_s14 = sld [smem:[#allocation8_spill]] }
 0x21a   : > { %s1079_s18 = smov %s786_s19  ;;  %s1080_s19 = smov %s790_s20 }
 0x21b   : > { %s1081_s20 = smov %s939_s15  ;;  %s1082_s21 = smov %s798_s22 }
 0x21c   : > { %s1083_s22 = smov %s928_s11  ;;  %s1084_s23 = smov %s810_s25 }
 0x21d   : > { %s1085_s24 = smov %s814_s26  ;;  %17 = sbr.rel (!%p15_p13) target bundleno = 9 (0x9), region = 129 }
 0x21e   : > { %s1086_s25 = smov %s1077_s0 }
 0x21f   : > { %s1087_s26 = smov %s1078_s14 }
 0x224   :  { %491 = vsyncpa [#allocation5], 1 }
 0x225   :  { %493 = vsyncpa [#allocation5 + $0x1], 1 }

// kernel: _decoder_forward_2d.1
= control target key start
LH: loop header
LB: loop body
LE: loop exit
PB: predicated region body
PF: predicated region fallthrough
CT: control target
= control target key end

     0   :  { %s1058_s0 = inlined_call_operand.vmem [shape: bf16[16,32], index: 0, kind: input, shape index: {}]   ;;  %s1059_s1 = inlined_call_operand.vmem [shape: bf16[32,32], index: 1, kind: input, shape index: {}]   ;;  %s1060_s2 = inlined_call_operand.vmem [shape: f32[1,32], index: 2, kind: input, shape index: {}]   ;;  %s1061_s3 = inlined_call_operand.vmem [shape: bf16[32,256], index: 3, kind: input, shape index: {}]   ;;  %s1062_s4 = inlined_call_operand.vmem [shape: f32[1,256], index: 4, kind: input, shape index: {}]   ;;  %s1063_s5 = inlined_call_operand.hbm [shape: f32[16,256], index: 5, kind: output, shape index: {}]  }
   0x1   :  { %1067 = sst [smem:[#allocation9_spill]] %s1058_s0 }
   0x2   :  { %1068 = sst [smem:[#allocation10_spill]] %s1061_s3 }
   0x3   :  { %10 = vsyncpa [#allocation5], 0 }
   0x4   :  { %12 = vsyncpa [#allocation5 + $0x1], 0  ;;  %s855_s18 = smov 0   ;;  %s857_s19 = smov 0  }
   0x5   :  { %s859_s20 = smov 0   ;;  %s861_s21 = smov 0  }
   0x6   :  { %s863_s22 = smov 0   ;;  %s865_s23 = smov 0  }
   0x7   :  { %s867_s24 = smov 0   ;;  %s869_s25 = smov 0  }
   0x8   :  { %s871_s26 = smov 0   ;;  %s873_s27 = smov 0  }
   0x9 LB: > { %s564_s28 = sadd.s32 4294967295, %s818_s27   ;;  %s565_s29 = sadd.s32 4294967294, %s818_s27   ;;  %s818_s27 = sphi %s873_s27, %s18_s27   ;;  %s814_s26 = sphi %s871_s26, %s1087_s26   ;;  %s810_s25 = sphi %s869_s25, %s1086_s25   ;;  %s806_s24 = sphi %s867_s24, %s1085_s24   ;;  %s802_s23 = sphi %s865_s23, %s1084_s23   ;;  %s798_s22 = sphi %s863_s22, %s1083_s22   ;;  %s794_s21 = sphi %s861_s21, %s1082_s21   ;;  %s790_s20 = sphi %s859_s20, %s1081_s20   ;;  %s786_s19 = sphi %s857_s19, %s1080_s19   ;;  %s782_s18 = sphi %s855_s18, %s1079_s18  }
   0xa   : > { %s27_s30 = sadd.s32 1, %s810_s25  ;;  %s30_s6 = sadd.s32 1, %s814_s26 }
   0xb   : > { %p28_p0 = scmp.ge.s32.totalorder %s27_s30, 2  ;;  %s105_s7 = sadd.s32 1, %s798_s22 }
   0xc   : > { %p112_p1 = scmp.ne.s32.totalorder %s798_s22, %s794_s21  ;;  %p113_p2 = scmp.eq.s32.totalorder %s818_s27, 0 }
   0xd   : > { %s1089_s30 = smov (%p28_p0, %s27_s30), 0  ;;  %s1091_s6 = smov (!%p28_p0, %s30_s6), %s814_s26 }
   0xe   : > { %1069 = sst [smem:[#allocation7_spill]] %s1089_s30  ;;  %s102_s8 = ssub.s32 %s810_s25, %s1089_s30 }
   0xf   : > { %p918_p3 = por %p113_p2, %p112_p1  ;;  %p32_p4 = scmp.ge.s32.totalorder %s1091_s6, 2 }
  0x10   : > { %p103_p5 = scmp.eq.s32.totalorder %s102_s8, 0  ;;  %s154_s10 = sadd.s32 1, %s790_s20 }
  0x11   : > { %p164_p6 = scmp.ne.s32.totalorder %s790_s20, %s786_s19  ;;  %s1093_s6 = smov (%p32_p4, %s1091_s6), 0 }
  0x12   : > { %1071 = sst [smem:[#allocation8_spill]] %s1093_s6  ;;  %s149_s12 = ssub.s32 %s814_s26, %s1093_s6 }
  0x13   : > { %s928_s11 = scalar_select %p103_p5, %s798_s22, %s105_s7  }
  0x14   : > { %p165_p7 = scmp.eq.s32.totalorder %s564_s28, 3  ;;  %s151_s13 = sor.u32 %s149_s12, %s102_s8 }
  0x15   : > { %p170_p8 = scmp.ne.s32.totalorder %s786_s19, %s782_s18  ;;  %p152_p9 = scmp.eq.s32.totalorder %s151_s13, 0 }
  0x16   : > { %p934_p10 = por %p165_p7, %p164_p6  ;;  %p171_p11 = scmp.eq.s32.totalorder %s565_s29, 3 }
  0x17   : > { %s939_s15 = scalar_select %p152_p9, %s790_s20, %s154_s10  }
  0x18   : > { %p941_p12 = por %p171_p11, %p170_p8  ;;  %p567_p13 = scmp.ge.s32.totalorder %s818_s27, 4 }
  0x1a   : > { %196 = sbr.rel (%p567_p13) target bundleno = 45 (0x2d), region = 28 }
  0x21   : > { %206 = sbr.rel (!%p918_p3) target bundleno = 45 (0x2d), region = 36  ;;  %s208_s17 = sand.u32 (%p918_p3), 1, %s798_s22  }
  0x22   : > { %s569_s28 = sshll.u32 (%p918_p3), %s810_s25, 2  ;;  %s568_s7 = sshll.u32 (%p918_p3), %s208_s17, 4 }
  0x23   : > { %s1074_s3 = sld [smem:[#allocation10_spill]] (%p918_p3)  ;;  %s210_s10 = scalar_lea.vmem (%p918_p3), [#allocation3], %s568_s7 }
  0x29   : > { %s212_s29 = scalar_lea.vmem %s1074_s3, %s569_s28 }
  0x2a   : > { %v228_v0 = vld [vmem:[%s212_s29] sm:$0xf]  ;;  %v230_v1 = vld [vmem:[%s212_s29 + $0x8] sm:$0xf]  ;;  %v232_v2 = vld [vmem:[%s212_s29 + $0x10] sm:$0xf] }
  0x2b   : > { %229 = vst [vmem:[%s210_s10] sm:$0xf] %v228_v0  ;;  %231 = vst [vmem:[%s210_s10 + $0x4] sm:$0xf] %v230_v1  ;;  %v234_v3 = vld [vmem:[%s212_s29 + $0x18] sm:$0xf] }
  0x2c   : > { %233 = vst [vmem:[%s210_s10 + $0x8] sm:$0xf] %v232_v2  ;;  %235 = vst [vmem:[%s210_s10 + $0xc] sm:$0xf] %v234_v3 }
  0x2d PF: > { %p570_p0 = scmp.ge.s32.totalorder %s818_s27, 1  ;;  %p265_p1 = scmp.lt.s32.totalorder %s818_s27, 5 }
  0x2f   : > { %p266_p2 = pnand %p570_p0, %p265_p1 }
  0x30   : > { %s272_s9 = sand.u32 (!%p266_p2), 1, %s794_s21   ;;  %s1065_s13 = sand.u32 (!%p266_p2), 1, %s786_s19  }
  0x31   : > { %269 = sbr.rel (%p266_p2) target bundleno = 531 (0x213), region = 77  ;;  %s957_s17 = sshll.u32 (!%p266_p2), %s272_s9, 4 }
  0x32   : > { %s961_s28 = sshll.u32 (!%p266_p2), %s1065_s13, 3  ;;  %p303_p3 = scmp.lt.s32.totalorder (!%p266_p2), %s806_s24, 1 }
  0x33   : > { %s1075_s0 = sld [smem:[#allocation9_spill]] (!%p266_p2)  ;;  %s274_s3 = scalar_lea.vmem (!%p266_p2), [#allocation3], %s957_s17 }
  0x34   : > { %s302_s6 = scalar_lea.vmem (!%p266_p2), [#allocation4], %s961_s28  ;;  %p574_p4 = scmp.ne.s32.totalorder (!%p266_p2), %s802_s23, 0 }
  0x38   : > { %s304_s7 = scalar_select %p303_p3, %s806_s24, 1 }
  0x39   : > { %311 = sbr.rel (%p574_p4) target bundleno = 294 (0x126), region = 85  ;;  %v702_v4 = vld [vmem:[%s1059_s1] sm:$0xff] (!%p574_p4)   ;;  %v820_v5 = vmov (!%p574_p4), 0.0   ;;  %v703_v6 = vld [vmem:[%s1059_s1 + $0x8] sm:$0xff] (!%p574_p4)   ;;  %vm821_vm0 = vmmov (!%p574_p4), 0   ;;  %vm336_vm1 = vcmask (!%p574_p4), 261120  }
  0x3a   : > { %s573_s8 = sshll.u32 %s304_s7, 2  ;;  %595 = vmatprep.subr.bf16.mxu0 (!%p574_p4), %v820_v5  ;;  %599 = vmatprep.mubr.msk.bf16.mxu0 (!%p574_p4), %vm821_vm0, %v820_v5  ;;  %v575_v8 = vld [vmem:[%s1060_s2] ss:$0 sm:$0xff] (!%p574_p4)  ;;  %vm382_vm2 = vcmask (!%p574_p4), 257024  }
  0x3b   : > { %s306_s10 = scalar_lea.vmem %s1075_s0, %s573_s8  ;;  %596 = vmatpush3.bf16.msra.mxu0 (!%p574_p4), %v702_v4 }
  0x3c   : > { %597 = vmatprep.subr.bf16.mxu0 (!%p574_p4), %v820_v5  ;;  %v312_v7 = vld [vmem:[%s306_s10] sm:$0xf] (!%p574_p4) }
  0x3f   : > { %598 = vmatpush3.bf16.msra.mxu0 (!%p574_p4), %v703_v6 }
  0x42   : > { %600 = vmatmul.mubr.msk.bf16.vlgmr.msra.gmra.mrb[0].mxu0 %vm336_vm1, %v312_v7 }
 0x115   : > { %v374_v9 = vpop.f32.mrb[0].mxu0 }
 0x116   : > { %v375_v10 = vadd.f32 %v575_v8, %v374_v9  ;;  %v601_v11 = vpop.f32.mrb[1].mxu0 }
 0x117   : > { %v377_v12 = vpop.f32.mrb[2].mxu0 }
 0x118   : > { %704 = vtanh.f32 %v375_v10  ;;  %v602_v13 = vpop.f32.mrb[3].mxu0 }
 0x122   : > { %v705_v14 = vpop.eup %704 }
 0x123   : > { %v381_v15 = vpack.c.bf16 %v705_v14, %v705_v14 }
 0x125   : > { %383 = vst.msk [vmem:[#allocation2] sm:$0xf] %vm382_vm2, %v381_v15 }
 0x126 PF: > { %v706_v16 = vld [vmem:[%s274_s3] sm:$0xff]   ;;  %v822_v17 = vmov 0.0   ;;  %v707_v18 = vld [vmem:[%s274_s3 + $0x8] sm:$0xff]   ;;  %vm823_vm3 = vmmov 0   ;;  %vm412_vm4 = vcmask 261120   ;;  %s579_s30 = sshll.u32 %s802_s23, 7 }
 0x127   : > { %603 = vmatprep.subr.bf16.mxu0 %v822_v17  ;;  %607 = vmatprep.mubr.msk.bf16.mxu0 %vm823_vm3, %v822_v17  ;;  %s385_s13 = sshra.s32 %s579_s30, 7  ;;  %s585_s12 = sshll.u32 %s806_s24, 1 }
 0x128   : > { %604 = vmatpush3.bf16.msra.mxu0 %v706_v16  ;;  %s387_s21 = scalar_lea.vmem %s1062_s4, %s385_s13  ;;  %s469_s17 = sadd.s32 %s802_s23, %s585_s12 }
 0x129   : > { %605 = vmatprep.subr.bf16.mxu0 %v822_v17  ;;  %v580_v20 = vld [vmem:[%s387_s21] ss:$0 sm:$0xff]  ;;  %s586_s3 = sshll.u32 %s469_s17, 7  ;;  %s473_s9 = sshll.u32 %s302_s6, 4  ;;  %s997_s9 = int_to_ptr.vmem [resolvable:$true] %s473_s9 }
 0x12a   : > { %s995_s0 = scalar_lea.hbm %s1063_s5, %s586_s3  ;;  %s1076_s23 = sand.u32 1, %s786_s19  }
 0x12b   : > { %s458_s24 = scalar_lea.sflag [#allocation5], %s1076_s23  ;;  %s708_s30 = scalar_lea.vmem %s997_s9, 128 }
 0x12c   : > { %606 = vmatpush3.bf16.msra.mxu0 %v707_v18  ;;  %v389_v19 = vld [vmem:[#allocation2] sm:$0xf]  ;;  %p709_p5 = scmp.ne.s32.totalorder %s997_s9, %s708_s30  ;;  %s824_s13 = smov [#allocation4]  }
 0x12d   : > { %s712_s12 = sshll.u32 %s824_s13, 4  ;;  %s713_s12 = int_to_ptr.vmem [resolvable:$false] %s712_s12 }
 0x12e   : > { %p710_p6 = pnand %p709_p5, %p934_p10  ;;  %s714_s29 = scalar_lea.vmem %s713_s12, 256 }
 0x12f   : > { %608 = vmatmul.mubr.msk.bf16.vlgmr.msra.gmra.mrb[0].mxu0 %vm412_vm4, %v389_v19  ;;  %p715_p8 = scmp.lt.s32.totalorder %s997_s9, %s713_s12  ;;  %p716_p9 = scmp.lt.s32.totalorder %s714_s29, %s708_s30 }
 0x130   : > { %p711_p7 = pneg %p710_p6 }
 0x131   : > { %p717_p11 = por %p716_p9, %p715_p8 }
 0x133   : > { %p718_p13 = pnand %p717_p11, %p711_p7 }
 0x202   : > { %v450_v21 = vpop.f32.mrb[0].mxu0 }
 0x203   : > { %v451_v22 = vadd.f32 %v580_v20, %v450_v21  ;;  %v609_v23 = vpop.f32.mrb[1].mxu0 }
 0x204   : > { %v453_v24 = vpop.f32.mrb[2].mxu0 }
 0x205   : > { %456 = vst [vmem:[%s302_s6] sm:$0xff] %v451_v22  ;;  %v610_v25 = vpop.f32.mrb[3].mxu0 }
 0x206   : > { %721 = shalt.err (!%p718_p13)
}
 0x207   : > { %s722_s6 = scalar_lea.hbm %s995_s0, 128  ;;  %s726_s21 = scalar_lea.hbm %s1063_s5, 512 }
 0x208   : > { %p723_p0 = scmp.ne.s32.totalorder %s995_s0, %s722_s6  ;;  %p727_p3 = scmp.lt.u32.totalorder %s995_s0, %s1063_s5 }
 0x209   : > { %p728_p4 = scmp.lt.u32.totalorder %s726_s21, %s722_s6  ;;  %p730_p6 = scmp.lt.u32.totalorder %s722_s6, %s995_s0 }
 0x20a   : > { %p724_p1 = pnand %p723_p0, %p934_p10 }
 0x20b   : > { %p729_p5 = por %p728_p4, %p727_p3 }
 0x20c   : > { %p725_p2 = pneg %p724_p1 }
 0x20d   : > { %p731_p7 = por %p730_p6, %p729_p5 }
 0x20f   : > { %p732_p8 = pnand %p731_p7, %p725_p2 }
 0x211   : > { %735 = shalt.err (!%p732_p8)
}
 0x212   : > { %611 = dma.vmem_to_hbm [thread:$0]  (%p934_p10), %s997_s9, 128, %s995_s0, %s458_s24  }
 0x213 PF: > { %p617_p9 = scmp.ge.s32.totalorder %s818_s27, 2  ;;  %s485_s7 = sand.u32 1, %s782_s18  }
 0x214   : > { %s486_s8 = scalar_lea.sflag [#allocation5], %s485_s7 }
 0x215   : > { %p614_p11 = pnand %p617_p9, %p941_p12 }
 0x217   : > { %777 = dma.done.wait (!%p614_p11), %s486_s8, 128  }
 0x218   : > { %779 = vsyncadd (!%p614_p11), %s486_s8, 4294967168  ;;  %s18_s27 = sadd.s32 1, %s818_s27   ;;  %s1077_s0 = sld [smem:[#allocation7_spill]] }
 0x219   : > { %p15_p13 = scmp.ge.s32.totalorder %s18_s27, 6   ;;  %s1078_s14 = sld [smem:[#allocation8_spill]] }
 0x21a   : > { %s1079_s18 = smov %s786_s19  ;;  %s1080_s19 = smov %s790_s20 }
 0x21b   : > { %s1081_s20 = smov %s939_s15  ;;  %s1082_s21 = smov %s798_s22 }
 0x21c   : > { %s1083_s22 = smov %s928_s11  ;;  %s1084_s23 = smov %s810_s25 }
 0x21d   : > { %s1085_s24 = smov %s814_s26  ;;  %17 = sbr.rel (!%p15_p13) target bundleno = 9 (0x9), region = 129 }
 0x21e   : > { %s1086_s25 = smov %s1077_s0 }
 0x21f   : > { %s1087_s26 = smov %s1078_s14 }
 0x224   :  { %491 = vsyncpa [#allocation5], 1 }
 0x225   :  { %493 = vsyncpa [#allocation5 + $0x1], 1 }

</bundles_post_ra>
